<compile_context>
chip_gen: v7x
topology: tpu7x:2x2x1
jax: 0.10.0
libtpu: 0.0.40
codegen_flags: <defaults>
</compile_context>

<pallas_src>
import functools

import jax
import jax.numpy as jnp
import numpy as np
from jax.experimental import pallas as pl
from jax.experimental.pallas import tpu as pltpu


# ----------------------------------------------------------------------------- kernel


def _make_fused_ffn_kernel(layer_shapes, compute_dtype):
    """Fused kernel for a chain of Linear+ReLU layers, computed transposed.

    Ref order: (x_ref, w_ref, b_ref, out_ref)
      x_ref  : (TB, In0)             activation tile (batch on sublanes)
      w_ref  : (L, MAX_OUT, MAX_IN)  packed weights, PyTorch (out, in) orientation
      b_ref  : (L, MAX_OUT, 1)       packed biases (f32)
      out_ref: (Out_last, TB)        transposed output tile (batch on lanes)
    """
    num_layers = len(layer_shapes)

    def kernel(x_ref, w_ref, b_ref, out_ref):
        out0, in0 = layer_shapes[0]
        # Static slices of the packed parameter buffers.
        w0 = w_ref[0, :out0, :in0]                 # (out0, in0), compute_dtype
        b0 = b_ref[0, :out0, :]                    # (out0, 1),   f32

        # First layer as a rhs-transposed matmul: y_t[o, b] = sum_i w0[o, i] * x[b, i]
        # -> no transpose of x anywhere, result already (features, batch).
        x = x_ref[...].astype(compute_dtype)       # (TB, in0)
        y = jax.lax.dot_general(
            w0, x,
            dimension_numbers=(((1,), (1,)), ((), ())),
            preferred_element_type=jnp.float32,
        )                                          # (out0, TB), f32
        y = jnp.maximum(y + b0, 0.0)               # f32 bias + ReLU epilogue

        # Remaining layers stay in the (features x batch) orientation so every
        # intermediate is lane-dense (batch fills the 128-lane axis).
        for l in range(1, num_layers):
            out_l, in_l = layer_shapes[l]
            w = w_ref[l, :out_l, :in_l]            # (out_l, in_l)
            b = b_ref[l, :out_l, :]                # (out_l, 1)
            # NOTE: the final 32->1 layer could be done on the VPU+XLU (multiply +
            # cross-sublane reduce) instead of a ~0.4%-utilized MXU pass; kept on the
            # MXU here for simplicity since it is a single pass per tile.
            y = jnp.dot(w, y.astype(compute_dtype),
                        preferred_element_type=jnp.float32)
            y = jnp.maximum(y + b, 0.0)

        out_ref[...] = y.astype(out_ref.dtype)

    return kernel


# ---------------------------------------------------------------------------- wrapper


def _round_up(x, m):
    return ((x + m - 1) // m) * m


@functools.partial(jax.jit, static_argnames=("layer_shapes", "compute_dtype"))
def ffn_forward(x, w_buf, b_buf, *, layer_shapes, compute_dtype=jnp.bfloat16):
    """x: [B, In0] f32; packed params from pack_ffn_params. Returns flat [B*Out_last]."""
    B, in0 = x.shape
    out_dim = layer_shapes[-1][0]

    # Batch tile: >=128 so intermediates and the output store are lane-dense, capped
    # at 512 so the (32, TB) f32 intermediate stays well inside the 64-vreg file and
    # the double-buffered x/out tiles stay far below VMEM limits (also on v7x 64 MiB).
    TB = min(512, _round_up(B, 128))
    B_pad = _round_up(B, TB)

    # bf16 activations: halves the dominant HBM stream and uses the MXU's native
    # bf16 path (in a real model the producer would emit bf16 directly).
    xt = x.astype(compute_dtype)
    if B_pad != B:
        xt = jnp.pad(xt, ((0, B_pad - B), (0, 0)))

    kernel = _make_fused_ffn_kernel(layer_shapes, compute_dtype)

    out_t = pl.pallas_call(
        kernel,
        out_shape=jax.ShapeDtypeStruct((out_dim, B_pad), jnp.float32),
        grid=(B_pad // TB,),
        in_specs=[
            pl.BlockSpec((TB, in0), lambda i: (i, 0)),        # x: tiled over batch
            pl.BlockSpec(w_buf.shape, lambda i: (0, 0, 0)),   # weights: VMEM-resident
            pl.BlockSpec(b_buf.shape, lambda i: (0, 0, 0)),   # biases:  VMEM-resident
        ],
        out_specs=pl.BlockSpec((out_dim, TB), lambda i: (0, i)),
        compiler_params=pltpu.CompilerParams(
            dimension_semantics=("parallel",)),               # megacore sharding (v7x)
    )(xt, w_buf, b_buf)

    out_t = out_t[:, :B]
    if out_dim == 1:
        # Layout-free flatten: (1, B) row-major == PyTorch (B, 1).view(-1).
        return out_t.reshape(-1)
    # General case: PyTorch's y.view(-1) is batch-major, so a transpose is required.
    return out_t.T.reshape(-1)


# ------------------------------------------------------------------------ params utils


def xavier_uniform(key, fan_in, fan_out):
    """xavier_uniform init, PyTorch nn.Linear weight orientation (out, in)."""
    limit = float(np.sqrt(6.0 / (fan_in + fan_out)))
    return jax.random.uniform(key, (fan_out, fan_in), dtype=jnp.float32,
                              minval=-limit, maxval=limit)


def init_ffn_params(key, lst_structure):
    """Returns a list of (W [out, in], b [out]) mirroring LinearLayer + weights_init."""
    params = []
    for lyr in lst_structure:
        ip, op = lyr["input_size"], lyr["output_size"]
        key, wk, bk = jax.random.split(key, 3)
        w = xavier_uniform(wk, ip, op)
        b = jax.random.uniform(bk, (op,), dtype=jnp.float32, minval=-0.01, maxval=0.01)
        params.append((w, b))
    return params


def pack_ffn_params(params, compute_dtype=jnp.bfloat16):
    """Pack all layers' weights/biases into two buffers (one DMA each).

    Weights are stored in compute_dtype (bf16) for native MXU rate / half HBM bytes;
    biases stay f32 so the bias+ReLU epilogue is pure f32 (safe on v5e's f32-only VPU).
    """
    L = len(params)
    max_out = max(w.shape[0] for w, _ in params)
    max_in = max(w.shape[1] for w, _ in params)
    w_np = np.zeros((L, max_out, max_in), np.float32)
    b_np = np.zeros((L, max_out, 1), np.float32)
    layer_shapes = []
    for l, (w, b) in enumerate(params):
        o, i = w.shape
        w_np[l, :o, :i] = np.asarray(w)
        b_np[l, :o, 0] = np.asarray(b).reshape(-1)
        layer_shapes.append((o, i))
    w_buf = jnp.asarray(w_np).astype(compute_dtype)
    b_buf = jnp.asarray(b_np)
    return w_buf, b_buf, tuple(layer_shapes)


# -------------------------------------------------------------------------------- main


if __name__ == "__main__":
    # Small FFN structure: 16 -> 32 -> 32 -> 1, all ReLU (LinearLayer default act,
    # including the final layer, as in the reference module).
    lst_structure = [
        {"input_size": 16, "output_size": 32, "act": "nn.ReLU()"},
        {"input_size": 32, "output_size": 32, "act": "nn.ReLU()"},
        {"input_size": 32, "output_size": 1,  "act": "nn.ReLU()"},
    ]

    key = jax.random.PRNGKey(0)
    key, xk = jax.random.split(key)
    batch = 8
    x = jax.random.normal(xk, (batch, lst_structure[0]["input_size"]), dtype=jnp.float32)

    params = init_ffn_params(key, lst_structure)
    w_buf, b_buf, layer_shapes = pack_ffn_params(params)

    out = ffn_forward(x, w_buf, b_buf, layer_shapes=layer_shapes)  # fused pallas_call
    out = jax.block_until_ready(out)

    # Pure-JAX reference (the `base` arg of the PyTorch forward is unused). Mirrors
    # the kernel's bf16 matmul operands with f32 accumulation and f32 bias+ReLU.
    y = x
    for w, b in params:
        y = jnp.dot(y.astype(jnp.bfloat16), w.astype(jnp.bfloat16).T,
                    preferred_element_type=jnp.float32)
        y = jnp.maximum(y + b[None, :], 0.0)
    ref = y.reshape(-1)

    assert out.shape == (batch * lst_structure[-1]["output_size"],), out.shape
    max_err = float(jnp.max(jnp.abs(out - ref)))
    assert jnp.allclose(out, ref, atol=1e-3, rtol=1e-3), max_err

    print("KERNEL_OK")
</pallas_src>

<mosaic_0001>
module attributes {stable_mosaic.version = 11 : i64} {
  func.func @kernel(%arg0: i32, %arg1: memref<128x16xbf16, #tpu.memory_space<vmem>>, %arg2: memref<3x32x32xbf16, #tpu.memory_space<vmem>>, %arg3: memref<3x32x1xf32, #tpu.memory_space<vmem>>, %arg4: memref<1x128xf32, #tpu.memory_space<vmem>>) attributes {dimension_semantics = [#tpu.dimension_semantics<parallel>], iteration_bounds = array<i64: 1>, scalar_prefetch = 0 : i64, scratch_operands = 0 : i64, tpu.core_type = #tpu.core_type<tc>, window_params = [{transform_indices = @transform_0, window_bounds = array<i64: 128, 16>}, {pipeline_mode = #tpu.pipeline_mode<synchronous>, transform_indices = @transform_1, window_bounds = array<i64: 3, 32, 32>}, {pipeline_mode = #tpu.pipeline_mode<synchronous>, transform_indices = @transform_2, window_bounds = array<i64: 3, 32, 1>}, {transform_indices = @transform_3, window_bounds = array<i64: 1, 128>}]} {
    %c0 = arith.constant 0 : index
    %c0_0 = arith.constant 0 : index
    %c0_1 = arith.constant 0 : index
    %0 = vector.load %arg2[%c0, %c0_0, %c0_1] : memref<3x32x32xbf16, #tpu.memory_space<vmem>>, vector<1x32x16xbf16>
    %1 = vector.shape_cast %0 : vector<1x32x16xbf16> to vector<32x16xbf16>
    %c0_2 = arith.constant 0 : index
    %c0_3 = arith.constant 0 : index
    %c0_4 = arith.constant 0 : index
    %2 = vector.load %arg3[%c0_2, %c0_3, %c0_4] : memref<3x32x1xf32, #tpu.memory_space<vmem>>, vector<1x32x1xf32>
    %3 = vector.shape_cast %2 : vector<1x32x1xf32> to vector<32x1xf32>
    %c0_5 = arith.constant 0 : index
    %c0_6 = arith.constant 0 : index
    %4 = vector.load %arg1[%c0_5, %c0_6] : memref<128x16xbf16, #tpu.memory_space<vmem>>, vector<128x16xbf16>
    %cst = arith.constant dense<0.000000e+00> : vector<32x128xf32>
    %5 = tpu.matmul %1, %4, %cst {dimension_numbers = #tpu.dot_dimension_numbers<[1], [1], [0], [0], [0, 0, 1, 0], [], []>} : vector<32x16xbf16>, vector<128x16xbf16>, vector<32x128xf32> -> vector<32x128xf32>
    %6 = vector.broadcast %3 : vector<32x1xf32> to vector<32x128xf32>
    %7 = arith.addf %5, %6 : vector<32x128xf32>
    %cst_7 = arith.constant 0.000000e+00 : f32
    %8 = vector.broadcast %cst_7 : f32 to vector<32x128xf32>
    %9 = arith.maximumf %7, %8 : vector<32x128xf32>
    %c1 = arith.constant 1 : index
    %c0_8 = arith.constant 0 : index
    %c0_9 = arith.constant 0 : index
    %10 = vector.load %arg2[%c1, %c0_8, %c0_9] : memref<3x32x32xbf16, #tpu.memory_space<vmem>>, vector<1x32x32xbf16>
    %11 = vector.shape_cast %10 : vector<1x32x32xbf16> to vector<32x32xbf16>
    %c1_10 = arith.constant 1 : index
    %c0_11 = arith.constant 0 : index
    %c0_12 = arith.constant 0 : index
    %12 = vector.load %arg3[%c1_10, %c0_11, %c0_12] : memref<3x32x1xf32, #tpu.memory_space<vmem>>, vector<1x32x1xf32>
    %13 = vector.shape_cast %12 : vector<1x32x1xf32> to vector<32x1xf32>
    %14 = arith.truncf %9 : vector<32x128xf32> to vector<32x128xbf16>
    %cst_13 = arith.constant dense<0.000000e+00> : vector<32x128xf32>
    %15 = tpu.matmul %11, %14, %cst_13 {dimension_numbers = #tpu.dot_dimension_numbers<[1], [0], [0], [1], [0, 0, 1, 1], [], []>} : vector<32x32xbf16>, vector<32x128xbf16>, vector<32x128xf32> -> vector<32x128xf32>
    %16 = vector.broadcast %13 : vector<32x1xf32> to vector<32x128xf32>
    %17 = arith.addf %15, %16 : vector<32x128xf32>
    %cst_14 = arith.constant 0.000000e+00 : f32
    %18 = vector.broadcast %cst_14 : f32 to vector<32x128xf32>
    %19 = arith.maximumf %17, %18 : vector<32x128xf32>
    %c2 = arith.constant 2 : index
    %c0_15 = arith.constant 0 : index
    %c0_16 = arith.constant 0 : index
    %20 = vector.load %arg2[%c2, %c0_15, %c0_16] : memref<3x32x32xbf16, #tpu.memory_space<vmem>>, vector<1x1x32xbf16>
    %21 = vector.shape_cast %20 : vector<1x1x32xbf16> to vector<1x32xbf16>
    %c2_17 = arith.constant 2 : index
    %c0_18 = arith.constant 0 : index
    %c0_19 = arith.constant 0 : index
    %22 = vector.load %arg3[%c2_17, %c0_18, %c0_19] : memref<3x32x1xf32, #tpu.memory_space<vmem>>, vector<1x1x1xf32>
    %23 = vector.shape_cast %22 : vector<1x1x1xf32> to vector<1x1xf32>
    %24 = arith.truncf %19 : vector<32x128xf32> to vector<32x128xbf16>
    %cst_20 = arith.constant dense<0.000000e+00> : vector<1x128xf32>
    %25 = tpu.matmul %21, %24, %cst_20 {dimension_numbers = #tpu.dot_dimension_numbers<[1], [0], [0], [1], [0, 0, 1, 1], [], []>} : vector<1x32xbf16>, vector<32x128xbf16>, vector<1x128xf32> -> vector<1x128xf32>
    %26 = vector.broadcast %23 : vector<1x1xf32> to vector<1x128xf32>
    %27 = arith.addf %25, %26 : vector<1x128xf32>
    %cst_21 = arith.constant 0.000000e+00 : f32
    %28 = vector.broadcast %cst_21 : f32 to vector<1x128xf32>
    %29 = arith.maximumf %27, %28 : vector<1x128xf32>
    %c0_22 = arith.constant 0 : index
    %c0_23 = arith.constant 0 : index
    %30 = vector.load %arg4[%c0_22, %c0_23] : memref<1x128xf32, #tpu.memory_space<vmem>>, vector<1x128xf32>
    tpu.vector_store %arg4[%c0_22, %c0_23], %29 {strides = array<i32>} : memref<1x128xf32, #tpu.memory_space<vmem>>, vector<1x128xf32>,
    return
  }
  func.func @transform_0(%arg0: i32) -> (i32, i32) {
    %c0_i32 = arith.constant 0 : i32
    %c0_i32_0 = arith.constant 0 : i32
    return %arg0, %c0_i32 : i32, i32
  }
  func.func @transform_1(%arg0: i32) -> (i32, i32, i32) {
    %c0_i32 = arith.constant 0 : i32
    %c0_i32_0 = arith.constant 0 : i32
    %c0_i32_1 = arith.constant 0 : i32
    %c0_i32_2 = arith.constant 0 : i32
    return %c0_i32, %c0_i32_0, %c0_i32_1 : i32, i32, i32
  }
  func.func @transform_2(%arg0: i32) -> (i32, i32, i32) {
    %c0_i32 = arith.constant 0 : i32
    %c0_i32_0 = arith.constant 0 : i32
    %c0_i32_1 = arith.constant 0 : i32
    %c0_i32_2 = arith.constant 0 : i32
    return %c0_i32, %c0_i32_0, %c0_i32_1 : i32, i32, i32
  }
  func.func @transform_3(%arg0: i32) -> (i32, i32) {
    %c0_i32 = arith.constant 0 : i32
    %c0_i32_0 = arith.constant 0 : i32
    return %c0_i32, %arg0 : i32, i32
  }
}

</mosaic_0001>

<bundles_post_ra>
// kernel: ffn_forward.1
= control target key start
LH: loop header
LB: loop body
LE: loop exit
PB: predicated region body
PF: predicated region fallthrough
CT: control target
= control target key end

     0   :  { %vm109_vm0 = vcmask 130048   ;;  %v460_v1 = vmov 0   ;;  %vm235_vm1 = vcmask 261120   ;;  %v461_v48 = vmov 0.0   ;;  %s573_s0 = inlined_call_operand.vmem [shape: bf16[128,16], index: 0, kind: input, shape index: {}]   ;;  %s574_s1 = inlined_call_operand.vmem [shape: bf16[3,32,32], index: 1, kind: input, shape index: {}]   ;;  %s575_s2 = inlined_call_operand.vmem [shape: f32[3,32,1], index: 2, kind: input, shape index: {}]   ;;  %s576_s3 = inlined_call_operand.vmem [shape: f32[1,128], index: 3, kind: output, shape index: {}]  }
   0x1   :  { %v448_v0 = vld [vmem:[%s573_s0] sm:$0xff]   ;;  %446 = vset.pattern.permute.xlu0 %v460_v1  ;;  %447 = vset.pattern.permute.xlu1 %v460_v1  ;;  %v449_v2 = vld [vmem:[%s573_s0 + $0x8] sm:$0xff]   ;;  %v450_v4 = vld [vmem:[%s573_s0 + $0x10] sm:$0xff]   ;;  %vm462_vm2 = vmmov 0  }
   0x2   :  { %435 = vmatprep.subr.msk.bf16.mxu0 %vm109_vm0, %v448_v0  ;;  %v117_v3 = vsel %vm109_vm0, %v448_v0, 0  ;;  %v120_v5 = vsel %vm109_vm0, %v449_v2, 0  ;;  %v456_v6 = vld [vmem:[%s574_s1] sm:$0xff]   ;;  %v21_v8 = vld [vmem:[%s575_s2 + $0x10] sm:$0xff]  ;;  %v20_v9 = vld [vmem:[%s575_s2 + $0x8] sm:$0xff]  ;;  %v123_v11 = vsel %vm109_vm0, %v450_v4, 0 }
   0x3   :  { %400 = vmatpush3.bf16.xpose.msra.mxu0 %v117_v3  ;;  %415 = vmatprep.mubr.msk.bf16.mxu0 %vm109_vm0, %v456_v6  ;;  %v19_v7 = vld [vmem:[%s575_s2] sm:$0xff]  ;;  %v22_v10 = vld [vmem:[%s575_s2 + $0x18] sm:$0xff]  ;;  %v372_v14 = vld [vmem:[%s575_s2 + $0x28] sm:$0xff] }
   0x4   :  { %436 = vmatprep.subr.msk.bf16.mxu0 %vm109_vm0, %v449_v2  ;;  %41 = vperm.xlu0 %446, %v19_v7   ;;  %v451_v12 = vld [vmem:[%s573_s0 + $0x18] sm:$0xff]   ;;  %v371_v13 = vld [vmem:[%s575_s2 + $0x20] sm:$0xff]  ;;  %v373_v15 = vld [vmem:[%s575_s2 + $0x30] sm:$0xff] }
   0x5   :  { %51 = vperm.xlu1 %447, %v21_v8   ;;  %v374_v16 = vld [vmem:[%s575_s2 + $0x38] sm:$0xff]  ;;  %v126_v17 = vsel %vm109_vm0, %v451_v12, 0  ;;  %v452_v18 = vld [vmem:[%s573_s0 + $0x20] sm:$0xff]   ;;  %v453_v21 = vld [vmem:[%s573_s0 + $0x28] sm:$0xff]  }
   0x6   :  { %v380_v19 = vld [vmem:[%s575_s2 + $0x40] sm:$0x1]  ;;  %v129_v20 = vsel %vm109_vm0, %v452_v18, 0  ;;  %v132_v22 = vsel %vm109_vm0, %v453_v21, 0  ;;  %v454_v23 = vld [vmem:[%s573_s0 + $0x30] sm:$0xff]   ;;  %v455_v25 = vld [vmem:[%s573_s0 + $0x38] sm:$0xff]  }
   0x7   :  { %v135_v24 = vsel %vm109_vm0, %v454_v23, 0  ;;  %v138_v26 = vsel %vm109_vm0, %v455_v25, 0  ;;  %v457_v27 = vld [vmem:[%s574_s1 + $0x8] sm:$0xff]   ;;  %v458_v28 = vld [vmem:[%s574_s1 + $0x10] sm:$0xff]   ;;  %v459_v47 = vld [vmem:[%s574_s1 + $0x18] sm:$0xff]  }
   0x8   :  { %46 = vperm.xlu0 %446, %v20_v9   ;;  %423 = vmatprep.mubr.msk.bf16.mxu1 %vm235_vm1, %v458_v28  ;;  %v379_v3 = vld [vmem:[%s574_s1 + $0x20] sm:$0x1] }
   0x9   :  { %56 = vperm.xlu1 %447, %v22_v10  }
   0xb   :  { %402 = vmatpush3.bf16.xpose.msra.mxu0 %v120_v5 }
   0xc   :  { %437 = vmatprep.subr.msk.bf16.mxu0 %vm109_vm0, %v450_v4  ;;  %207 = vperm.xlu0 %446, %v371_v13  }
   0xd   :  { %212 = vperm.xlu1 %447, %v372_v14  }
  0x10   :  { %217 = vperm.xlu0 %446, %v373_v15  }
  0x11   :  { %222 = vperm.xlu1 %447, %v374_v16  }
  0x13   :  { %404 = vmatpush3.bf16.xpose.msra.mxu0 %v123_v11 }
  0x14   :  { %438 = vmatprep.subr.msk.bf16.mxu0 %vm109_vm0, %v451_v12  ;;  %303 = vperm.xlu0 %446, %v380_v19  }
  0x1b   :  { %406 = vmatpush3.bf16.xpose.msra.mxu0 %v126_v17 }
  0x1c   :  { %439 = vmatprep.subr.msk.bf16.mxu0 %vm109_vm0, %v452_v18 }
  0x23   :  { %408 = vmatpush3.bf16.xpose.msra.mxu0 %v129_v20 }
  0x24   :  { %440 = vmatprep.subr.msk.bf16.mxu0 %vm109_vm0, %v453_v21 }
  0x2b   :  { %410 = vmatpush3.bf16.xpose.msra.mxu0 %v132_v22 }
  0x2c   :  { %441 = vmatprep.subr.msk.bf16.mxu0 %vm109_vm0, %v454_v23 }
  0x33   :  { %412 = vmatpush3.bf16.xpose.msra.mxu0 %v135_v24 }
  0x34   :  { %442 = vmatprep.subr.msk.bf16.mxu0 %vm109_vm0, %v455_v25 }
  0x3b   :  { %414 = vmatpush3.bf16.xpose.msra.mxu0 %v138_v26 }
  0x42   :  { %416 = vmatmul.mubr.msk.bf16.vlgmr.msra.gmra.mrb[0].mxu0 %vm109_vm0, %v457_v27 }
  0x83   :  { %v42_v30 = vpop.permute.xlu0 %41 }
  0x84   :  { %v52_v29 = vpop.permute.xlu1 %51 }
  0x87   :  { %v47_v37 = vpop.permute.xlu0 %46 }
  0x88   :  { %v57_v34 = vpop.permute.xlu1 %56 }
  0x8b   :  { %v208_v49 = vpop.permute.xlu0 %207 }
  0x8c   :  { %v213_v50 = vpop.permute.xlu1 %212 }
  0x8f   :  { %v218_v51 = vpop.permute.xlu0 %217 }
  0x90   :  { %v223_v55 = vpop.permute.xlu1 %222 }
  0x93   :  { %v304_v4 = vpop.permute.xlu0 %303 }
 0x115   :  { %v417_v31 = vpop.f32.mrb[0].mxu0 }
 0x116   :  { %v183_v32 = vadd.f32 %v417_v31, %v52_v29  ;;  %v174_v33 = vpop.f32.mrb[1].mxu0 }
 0x117   :  { %v175_v35 = vadd.f32 %v174_v33, %v42_v30  ;;  %v418_v36 = vpop.f32.mrb[2].mxu0 }
 0x118   :  { %v186_v38 = vadd.f32 %v418_v36, %v57_v34  ;;  %v177_v39 = vpop.f32.mrb[3].mxu0  ;;  %v191_v41 = vmax.f32 %v183_v32, 0.0 }
 0x119   :  { %v178_v40 = vadd.f32 %v177_v39, %v47_v37  ;;  %v189_v43 = vmax.f32 %v175_v35, 0.0 }
 0x11a   :  { %v192_v42 = vmax.f32 %v186_v38, 0.0 }
 0x11b   :  { %v190_v44 = vmax.f32 %v178_v40, 0.0 }
 0x11c   :  { %v204_v45 = vpack.c.bf16 %v192_v42, %v191_v41 }
 0x11d   :  { %v203_v46 = vpack.c.bf16 %v190_v44, %v189_v43 }
 0x11f   :  { %419 = vmatprep.subr.bf16.mxu1 %v203_v46 }
 0x120   :  { %420 = vmatpush3.bf16.msra.mxu1 %v203_v46 }
 0x121   :  { %421 = vmatprep.subr.bf16.mxu1 %v204_v45 }
 0x124   :  { %422 = vmatpush3.bf16.msra.mxu1 %v204_v45 }
 0x125   :  { %427 = vmatprep.subr.bf16.mxu1 %v461_v48 }
 0x127   :  { %424 = vmatmul.mubr.msk.bf16.vlgmr.msra.gmra.mrb[0].mxu1 %vm235_vm1, %v459_v47 }
 0x128   :  { %431 = vmatprep.mubr.msk.bf16.mxu1 %vm462_vm2, %v461_v48 }
 0x1fa   :  { %v425_v52 = vpop.f32.mrb[0].mxu1 }
 0x1fb   :  { %v285_v53 = vadd.f32 %v425_v52, %v218_v51  ;;  %v276_v54 = vpop.f32.mrb[1].mxu1 }
 0x1fc   :  { %v277_v56 = vadd.f32 %v276_v54, %v208_v49  ;;  %v426_v57 = vpop.f32.mrb[2].mxu1 }
 0x1fd   :  { %v288_v58 = vadd.f32 %v426_v57, %v223_v55  ;;  %v279_v59 = vpop.f32.mrb[3].mxu1  ;;  %v293_v61 = vmax.f32 %v285_v53, 0.0 }
 0x1fe   :  { %v280_v60 = vadd.f32 %v279_v59, %v213_v50  ;;  %v291_v63 = vmax.f32 %v277_v56, 0.0 }
 0x1ff   :  { %v294_v62 = vmax.f32 %v288_v58, 0.0 }
 0x200   :  { %v292_v0 = vmax.f32 %v280_v60, 0.0 }
 0x201   :  { %v300_v1 = vpack.c.bf16 %v294_v62, %v293_v61 }
 0x202   :  { %v299_v2 = vpack.c.bf16 %v292_v0, %v291_v63 }
 0x204   :  { %428 = vmatpush3.bf16.msra.mxu1 %v299_v2 }
 0x205   :  { %429 = vmatprep.subr.bf16.mxu1 %v461_v48 }
 0x208   :  { %430 = vmatpush3.bf16.msra.mxu1 %v300_v1 }
 0x20b   :  { %432 = vmatmul.mubr.msk.bf16.vlgmr.msra.gmra.mrb[4].mxu1 %vm235_vm1, %v379_v3 }
 0x2de   :  { %v343_v5 = vpop.f32.mrb[4].mxu1 }
 0x2df   :  { %v344_v6 = vadd.f32 %v343_v5, %v304_v4  ;;  %v433_v7 = vpop.f32.mrb[5].mxu1 }
 0x2e0   :  { %v346_v8 = vpop.f32.mrb[6].mxu1 }
 0x2e1   :  { %v349_v9 = vmax.f32 %v344_v6, 0.0  ;;  %v434_v10 = vpop.f32.mrb[7].mxu1 }
 0x2e3   :  { %350 = vst [vmem:[%s576_s3] sm:$0x1] %v349_v9 }

</bundles_post_ra>
